<compile_context>
chip_gen: v7x
topology: tpu7x:2x2x1
jax: 0.10.0
libtpu: 0.0.40
codegen_flags: <defaults>
</compile_context>

<pallas_src>
import functools
import math

import jax
import jax.numpy as jnp
from jax.experimental import pallas as pl
from jax.experimental.pallas import tpu as pltpu


# ----------------------------------------------------------------------------
# Generation-aware VMEM budget & tiling helpers
# ----------------------------------------------------------------------------
def _round_up(x, m):
    return ((x + m - 1) // m) * m


@functools.lru_cache(maxsize=None)
def _vmem_budget():
    """~3/4 of physical VMEM: ~96 MiB on v5e/v6e (128 MiB), ~48 MiB on v7x."""
    cap = 128 * 1024 * 1024
    try:
        info = pltpu.get_tpu_info()
        cap = int(getattr(info, "vmem_capacity_bytes", cap))
    except Exception:
        pass
    return (cap * 3) // 4


def _tile_cap():
    return 512 if _vmem_budget() >= 96 * 1024 * 1024 else 256


def _compiler_params(dim_sem, block_bytes):
    need = 2 * int(block_bytes) + (2 << 20)            # double-buffered + margin
    limit = min(max(need, 32 * 1024 * 1024), _vmem_budget())
    return pltpu.CompilerParams(dimension_semantics=dim_sem,
                                vmem_limit_bytes=int(limit))


def _row_plan(M):
    """cdiv grid over rows with a padded tile (multiple of 8).  Returns
    (tile, padded_rows, grid)."""
    cap = _tile_cap()
    g = max(1, -(-M // cap))
    tm = _round_up(-(-M // g), 8)
    return tm, g * tm, g


def _col_tile(N):
    cap = _tile_cap()
    if N <= cap or N % 128 != 0:
        return N
    for t in range(cap, 127, -128):
        if N % t == 0:
            return t
    return 128


def _pad_rows(x, Mp):
    M = x.shape[0]
    if Mp == M:
        return x
    return jnp.pad(x, ((0, Mp - M), (0, 0)))


def _gelu(x):
    # tanh-approx GELU (matches the custom gelu used by the reference FF)
    return 0.5 * x * (1.0 + jnp.tanh(0.7978845608028654 *
                                     (x + 0.044715 * x * x * x)))


# ----------------------------------------------------------------------------
# Plain linear kernel (bf16 MXU inputs, f32 accumulate, row/col tiled)
# ----------------------------------------------------------------------------
def _linear_kernel(*refs, activation, has_bias):
    if has_bias:
        x_ref, w_ref, b_ref, o_ref = refs
    else:
        x_ref, w_ref, o_ref = refs
        b_ref = None
    acc = jnp.dot(x_ref[...], w_ref[...], preferred_element_type=jnp.float32)
    if b_ref is not None:
        acc = acc + b_ref[...]
    if activation == "gelu":
        acc = _gelu(acc)
    o_ref[...] = acc.astype(o_ref.dtype)


def pallas_linear(x, w, b=None, activation=None, out_dtype=jnp.bfloat16):
    """x:(M,K) @ w:(K,N) [+ b] -> (M,N) out_dtype."""
    M, K = x.shape
    N = w.shape[1]
    tm, Mp, gm = _row_plan(M)
    tn = _col_tile(N)
    gn = N // tn

    xp = _pad_rows(x.astype(jnp.bfloat16), Mp)
    wb = w.astype(jnp.bfloat16)

    # Pick the grid order that minimizes total HBM re-reads: with rows as the
    # outer axis the weight is re-read gm times, with cols outer x is re-read
    # gn times.
    rows_outer = (Mp * K + gm * K * N) <= (gn * Mp * K + K * N)
    if rows_outer:
        grid = (gm, gn)
        x_spec = pl.BlockSpec((tm, K), lambda i, j: (i, 0))
        w_spec = pl.BlockSpec((K, tn), lambda i, j: (0, j))
        b_spec = pl.BlockSpec((1, tn), lambda i, j: (0, j))
        o_spec = pl.BlockSpec((tm, tn), lambda i, j: (i, j))
    else:
        grid = (gn, gm)
        x_spec = pl.BlockSpec((tm, K), lambda j, i: (i, 0))
        w_spec = pl.BlockSpec((K, tn), lambda j, i: (0, j))
        b_spec = pl.BlockSpec((1, tn), lambda j, i: (0, j))
        o_spec = pl.BlockSpec((tm, tn), lambda j, i: (i, j))

    in_specs = [x_spec, w_spec]
    args = [xp, wb]
    if b is not None:
        in_specs.append(b_spec)
        args.append(b.reshape(1, N).astype(jnp.float32))

    osize = max(jnp.dtype(out_dtype).itemsize, 2)
    block_bytes = tm * K * 2 + K * tn * 2 + tn * 4 + tm * tn * max(osize, 4)
    out = pl.pallas_call(
        functools.partial(_linear_kernel, activation=activation,
                          has_bias=b is not None),
        out_shape=jax.ShapeDtypeStruct((Mp, N), out_dtype),
        grid=grid,
        in_specs=in_specs,
        out_specs=o_spec,
        compiler_params=_compiler_params(("parallel", "parallel"), block_bytes),
    )(*args)
    return out[:M] if Mp != M else out


# ----------------------------------------------------------------------------
# Fused (linear [+ residual] + LayerNorm) kernels
# ----------------------------------------------------------------------------
def _linear_res_ln_kernel(x_ref, w_ref, b_ref, r_ref, g_ref, t_ref, o_ref, *, eps):
    y = jnp.dot(x_ref[...], w_ref[...], preferred_element_type=jnp.float32) + b_ref[...]
    h = r_ref[...].astype(jnp.float32) + y
    mu = jnp.mean(h, axis=-1, keepdims=True)
    hc = h - mu
    var = jnp.mean(hc * hc, axis=-1, keepdims=True)
    o_ref[...] = (hc * jax.lax.rsqrt(var + eps) * g_ref[...] + t_ref[...]
                  ).astype(o_ref.dtype)


def _add_ln_kernel(r_ref, y_ref, g_ref, t_ref, o_ref, *, eps):
    h = r_ref[...].astype(jnp.float32) + y_ref[...].astype(jnp.float32)
    mu = jnp.mean(h, axis=-1, keepdims=True)
    hc = h - mu
    var = jnp.mean(hc * hc, axis=-1, keepdims=True)
    o_ref[...] = (hc * jax.lax.rsqrt(var + eps) * g_ref[...] + t_ref[...]
                  ).astype(o_ref.dtype)


def pallas_add_layernorm(res, y, gamma, beta, eps=1e-5):
    """LayerNorm(res + y) * gamma + beta, bf16 in/out, f32 math."""
    M, D = res.shape
    tm, Mp, gm = _row_plan(M)
    block_bytes = 2 * tm * D * 2 + 2 * D * 4 + tm * D * 2 + tm * D * 4
    out = pl.pallas_call(
        functools.partial(_add_ln_kernel, eps=eps),
        out_shape=jax.ShapeDtypeStruct((Mp, D), jnp.bfloat16),
        grid=(gm,),
        in_specs=[pl.BlockSpec((tm, D), lambda i: (i, 0)),
                  pl.BlockSpec((tm, D), lambda i: (i, 0)),
                  pl.BlockSpec((1, D), lambda i: (0, 0)),
                  pl.BlockSpec((1, D), lambda i: (0, 0))],
        out_specs=pl.BlockSpec((tm, D), lambda i: (i, 0)),
        compiler_params=_compiler_params(("parallel",), block_bytes),
    )(_pad_rows(res.astype(jnp.bfloat16), Mp),
      _pad_rows(y.astype(jnp.bfloat16), Mp),
      gamma.reshape(1, D).astype(jnp.float32),
      beta.reshape(1, D).astype(jnp.float32))
    return out[:M] if Mp != M else out


def linear_residual_layernorm(x, w, b, residual, gamma, beta, eps=1e-5):
    """LayerNorm(residual + x @ w + b) with the matmul epilogue fused."""
    M, K = x.shape
    D = w.shape[1]
    if K * D * 2 > _vmem_budget() // 3:           # weight too big to hold whole
        y = pallas_linear(x, w, b)
        return pallas_add_layernorm(residual, y, gamma, beta, eps)

    tm, Mp, gm = _row_plan(M)
    block_bytes = (tm * K * 2 + K * D * 2 + D * 4 + tm * D * 2
                   + 2 * D * 4 + tm * D * 2 + tm * D * 4)
    out = pl.pallas_call(
        functools.partial(_linear_res_ln_kernel, eps=eps),
        out_shape=jax.ShapeDtypeStruct((Mp, D), jnp.bfloat16),
        grid=(gm,),
        in_specs=[pl.BlockSpec((tm, K), lambda i: (i, 0)),
                  pl.BlockSpec((K, D), lambda i: (0, 0)),
                  pl.BlockSpec((1, D), lambda i: (0, 0)),
                  pl.BlockSpec((tm, D), lambda i: (i, 0)),
                  pl.BlockSpec((1, D), lambda i: (0, 0)),
                  pl.BlockSpec((1, D), lambda i: (0, 0))],
        out_specs=pl.BlockSpec((tm, D), lambda i: (i, 0)),
        compiler_params=_compiler_params(("parallel",), block_bytes),
    )(_pad_rows(x.astype(jnp.bfloat16), Mp),
      w.astype(jnp.bfloat16),
      b.reshape(1, D).astype(jnp.float32),
      _pad_rows(residual.astype(jnp.bfloat16), Mp),
      gamma.reshape(1, D).astype(jnp.float32),
      beta.reshape(1, D).astype(jnp.float32))
    return out[:M] if Mp != M else out


def _ffn_res_ln_kernel(x_ref, w1_ref, b1_ref, w2_ref, b2_ref, g_ref, t_ref,
                       o_ref, *, eps):
    """LayerNorm(x + FF2(gelu(FF1(x)))); the (tm, 4D) intermediate stays in VMEM."""
    x = x_ref[...]
    h = _gelu(jnp.dot(x, w1_ref[...], preferred_element_type=jnp.float32)
              + b1_ref[...])
    y = jnp.dot(h.astype(w2_ref.dtype), w2_ref[...],
                preferred_element_type=jnp.float32) + b2_ref[...]
    r = x.astype(jnp.float32) + y
    mu = jnp.mean(r, axis=-1, keepdims=True)
    rc = r - mu
    var = jnp.mean(rc * rc, axis=-1, keepdims=True)
    o_ref[...] = (rc * jax.lax.rsqrt(var + eps) * g_ref[...] + t_ref[...]
                  ).astype(o_ref.dtype)


def ffn_residual_layernorm(x, w1, b1, w2, b2, gamma, beta, eps=1e-5):
    M, D = x.shape
    H = w1.shape[1]
    weight_bytes = 2 * (D * H + H * D)
    if weight_bytes > _vmem_budget() // 4:        # fall back to split kernels
        h = pallas_linear(x, w1, b1, activation="gelu")
        return linear_residual_layernorm(h, w2, b2, x, gamma, beta, eps)

    tm, Mp, gm = _row_plan(M)
    block_bytes = (tm * D * 2 + weight_bytes + H * 4 + D * 4 + 2 * D * 4
                   + tm * H * 4 + tm * D * 2 + tm * D * 4)
    out = pl.pallas_call(
        functools.partial(_ffn_res_ln_kernel, eps=eps),
        out_shape=jax.ShapeDtypeStruct((Mp, D), jnp.bfloat16),
        grid=(gm,),
        in_specs=[pl.BlockSpec((tm, D), lambda i: (i, 0)),
                  pl.BlockSpec((D, H), lambda i: (0, 0)),
                  pl.BlockSpec((1, H), lambda i: (0, 0)),
                  pl.BlockSpec((H, D), lambda i: (0, 0)),
                  pl.BlockSpec((1, D), lambda i: (0, 0)),
                  pl.BlockSpec((1, D), lambda i: (0, 0)),
                  pl.BlockSpec((1, D), lambda i: (0, 0))],
        out_specs=pl.BlockSpec((tm, D), lambda i: (i, 0)),
        compiler_params=_compiler_params(("parallel",), block_bytes),
    )(_pad_rows(x.astype(jnp.bfloat16), Mp),
      w1.astype(jnp.bfloat16), b1.reshape(1, H).astype(jnp.float32),
      w2.astype(jnp.bfloat16), b2.reshape(1, D).astype(jnp.float32),
      gamma.reshape(1, D).astype(jnp.float32),
      beta.reshape(1, D).astype(jnp.float32))
    return out[:M] if Mp != M else out


# ----------------------------------------------------------------------------
# Attention kernels (heads merged in-kernel, lane-dense (1, T, D) store,
# mask generated in-kernel from (B, 1, S) padding vector + iota for causal)
# ----------------------------------------------------------------------------
def _mha_math(q, k, v, mask, n_heads, scale, out_dtype):
    """q:(T,D) k,v:(S,D) bf16; mask:(T,S) f32 additive -> merged-head (T,D)."""
    T, D = q.shape
    dh = D // n_heads
    outs = []
    for h in range(n_heads):
        sl = slice(h * dh, (h + 1) * dh)
        s = jax.lax.dot_general(q[:, sl], k[:, sl], (((1,), (1,)), ((), ())),
                                preferred_element_type=jnp.float32)
        s = s * scale + mask
        s = s - jnp.max(s, axis=-1, keepdims=True)
        p = jnp.exp(s)
        p = p * pl.reciprocal(jnp.sum(p, axis=-1, keepdims=True), approx=True)
        outs.append(jnp.dot(p.astype(v.dtype), v[:, sl],
                            preferred_element_type=jnp.float32))
    return jnp.concatenate(outs, axis=-1).astype(out_dtype)


def _self_attn_kernel(qkv_ref, pm_ref, o_ref, *, n_heads, scale):
    T = qkv_ref.shape[1]
    D = qkv_ref.shape[2] // 3
    qkv = qkv_ref[0]                                  # (T, 3D) bf16
    q, k, v = qkv[:, :D], qkv[:, D:2 * D], qkv[:, 2 * D:]
    mask = jnp.broadcast_to(pm_ref[0], (T, T))        # (T, S) additive padding
    rows = jax.lax.broadcasted_iota(jnp.int32, (T, T), 0)
    cols = jax.lax.broadcasted_iota(jnp.int32, (T, T), 1)
    mask = mask + jnp.where(cols > rows, -1e9, 0.0).astype(jnp.float32)
    o_ref[0] = _mha_math(q, k, v, mask, n_heads, scale, o_ref.dtype)


def _cross_attn_kernel(q_ref, kv_ref, pm_ref, o_ref, *, n_heads, scale):
    T = q_ref.shape[1]
    D = q_ref.shape[2]
    S = kv_ref.shape[1]
    q = q_ref[0]                                      # (T, D)  bf16
    kv = kv_ref[0]                                    # (S, 2D) bf16
    k, v = kv[:, :D], kv[:, D:]
    mask = jnp.broadcast_to(pm_ref[0], (T, S))
    o_ref[0] = _mha_math(q, k, v, mask, n_heads, scale, o_ref.dtype)


def pallas_self_attention(qkv, pad_add, n_heads, scale):
    """qkv:(B,T,3D) bf16, pad_add:(B,1,T) f32 additive -> (B,T,D) bf16."""
    B, T, D3 = qkv.shape
    D = D3 // 3
    block_bytes = T * D3 * 2 + T * 4 + 2 * T * T * 4 + T * D * 4 + T * D * 2
    return pl.pallas_call(
        functools.partial(_self_attn_kernel, n_heads=n_heads, scale=scale),
        out_shape=jax.ShapeDtypeStruct((B, T, D), jnp.bfloat16),
        grid=(B,),
        in_specs=[pl.BlockSpec((1, T, D3), lambda b: (b, 0, 0)),
                  pl.BlockSpec((1, 1, T), lambda b: (b, 0, 0))],
        out_specs=pl.BlockSpec((1, T, D), lambda b: (b, 0, 0)),
        compiler_params=_compiler_params(("parallel",), block_bytes),
    )(qkv.astype(jnp.bfloat16), pad_add.astype(jnp.float32))


def pallas_cross_attention(q, kv, pad_add, n_heads, scale):
    """q:(B,T,D), kv:(B,S,2D) bf16, pad_add:(B,1,S) f32 -> (B,T,D) bf16."""
    B, T, D = q.shape
    S = kv.shape[1]
    block_bytes = (T * D * 2 + S * 2 * D * 2 + S * 4 + 2 * T * S * 4
                   + T * D * 4 + T * D * 2)
    return pl.pallas_call(
        functools.partial(_cross_attn_kernel, n_heads=n_heads, scale=scale),
        out_shape=jax.ShapeDtypeStruct((B, T, D), jnp.bfloat16),
        grid=(B,),
        in_specs=[pl.BlockSpec((1, T, D), lambda b: (b, 0, 0)),
                  pl.BlockSpec((1, S, 2 * D), lambda b: (b, 0, 0)),
                  pl.BlockSpec((1, 1, S), lambda b: (b, 0, 0))],
        out_specs=pl.BlockSpec((1, T, D), lambda b: (b, 0, 0)),
        compiler_params=_compiler_params(("parallel",), block_bytes),
    )(q.astype(jnp.bfloat16), kv.astype(jnp.bfloat16),
      pad_add.astype(jnp.float32))


# ----------------------------------------------------------------------------
# Model (glue in plain JAX, hot paths in Pallas)
# ----------------------------------------------------------------------------
def multihead_attention(lp, x, kv_input, kv_pad_add, causal, n_heads):
    """Merged-head attention output BEFORE the shared out-projection (which is
    linear, so it is folded into a single projection of the averaged outputs
    by the caller)."""
    B, T, D = x.shape
    scale = 1.0 / math.sqrt(D // n_heads)
    if causal:                     # self-attention: single fused QKV projection
        qkv = pallas_linear(x.reshape(B * T, D), lp["qkv_w"], lp["qkv_b"])
        qkv = qkv.reshape(B, T, 3 * D)
        return pallas_self_attention(qkv, kv_pad_add, n_heads, scale)
    # encoder-decoder attention: q from x, packed kv from context
    S = kv_input.shape[1]
    q = pallas_linear(x.reshape(B * T, D), lp["q_w"], lp["q_b"]).reshape(B, T, D)
    kv = pallas_linear(kv_input.reshape(B * S, D), lp["kv_w"], lp["kv_b"]
                       ).reshape(B, S, 2 * D)
    return pallas_cross_attention(q, kv, kv_pad_add, n_heads, scale)


def transformer_block(lp, x, self_pad_add, enc_contexts, n_heads):
    B, T, D = x.shape
    attends = [(x, self_pad_add, True)] + [(c, m, False) for (c, m) in enc_contexts]
    n_attn = len(attends)

    acc = None
    for kv, pad_add, causal in attends:
        a = multihead_attention(lp, x, kv, pad_add, causal, n_heads)
        acc = a.astype(jnp.float32) if acc is None else acc + a.astype(jnp.float32)
    attn_avg = acc / n_attn                      # "unweight" = plain average

    # shared out-projection + residual add + LayerNorm fused in one kernel
    x1 = linear_residual_layernorm(attn_avg.reshape(B * T, D),
                                   lp["out_w"], lp["out_b"],
                                   residual=x.reshape(B * T, D),
                                   gamma=lp["ln1_g"], beta=lp["ln1_b"])
    # feed-forward + residual add + LayerNorm fused in one kernel
    x2 = ffn_residual_layernorm(x1, lp["ff1_w"], lp["ff1_b"],
                                lp["ff2_w"], lp["ff2_b"],
                                lp["ln2_g"], lp["ln2_b"])
    return x2.reshape(B, T, D)


def transformer_module_forward(params, x_ids, enc_contexts):
    cfg = params["cfg"]
    pad = cfg["padding_idx"]
    D = cfg["embeddings_size"]

    padding_mask = (x_ids == pad)                                      # (B, T)
    positions = jnp.cumsum((~padding_mask).astype(jnp.int32), axis=-1)
    positions = jnp.where(padding_mask, 0, positions)
    positions = jnp.minimum(positions, cfg["n_pos_embeddings"])        # clamp

    # TODO(synk): embedding gathers stay in XLA (no clean Pallas gather here).
    h = (jnp.take(params["tok_emb"], x_ids, axis=0) * math.sqrt(D)
         + jnp.take(params["pos_emb"], positions, axis=0))
    h = h.astype(jnp.bfloat16)
    # embed_dropout -> identity (inference)

    # tiny (B, 1, T) additive key-padding vector; full masks built in-kernel.
    pad_add = jnp.where(padding_mask, -1e9, 0.0).astype(jnp.float32)[:, None, :]

    for lp in params["layers"]:
        h = transformer_block(lp, h, pad_add, enc_contexts, cfg["n_heads"])
    return h, padding_mask, pad_add


def model_forward(params, x_ids, context_ids_list):
    """== TransformerUnweightModel.forward(x, contexts): encode each context,
    decode x against them, project with the tied pre_softmax weight."""
    enc_contexts = []
    for c_ids in context_ids_list:
        c_h, _, c_pad_add = transformer_module_forward(params, c_ids, [])
        enc_contexts.append((c_h, c_pad_add))
    h, _, _ = transformer_module_forward(params, x_ids, enc_contexts)
    B, T, D = h.shape
    # tied pre_softmax: x @ emb^T via the precomputed transposed embedding
    logits = pallas_linear(h.reshape(B * T, D), params["emb_T"], None,
                           out_dtype=jnp.float32)
    return logits.reshape(B, T, -1)


# ----------------------------------------------------------------------------
# Deterministic parameter construction
# ----------------------------------------------------------------------------
def init_params(key, n_layers, n_embeddings, n_pos_embeddings, embeddings_size,
                padding_idx, n_heads):
    D = embeddings_size
    keys = jax.random.split(key, 2 + 4 * n_layers)
    ki = iter(keys)

    def nrm(k, shape):
        return (0.02 * jax.random.normal(k, shape)).astype(jnp.float32)

    tok_emb = nrm(next(ki), (n_embeddings, D)).at[padding_idx].set(0.0)
    pos_emb = nrm(next(ki), (n_pos_embeddings + 1, D)).at[0].set(0.0)
    emb_T = tok_emb.T.astype(jnp.bfloat16)      # precomputed tied projection

    layers = []
    for _ in range(n_layers):
        qkv_w = nrm(next(ki), (D, 3 * D)).astype(jnp.bfloat16)
        qkv_b = jnp.zeros((3 * D,), jnp.float32)
        layers.append(dict(
            qkv_w=qkv_w, qkv_b=qkv_b,
            # pre-split copies (same values) so cross-attention never slices
            # the weight at call time:
            q_w=qkv_w[:, :D], q_b=qkv_b[:D],
            kv_w=qkv_w[:, D:], kv_b=qkv_b[D:],
            out_w=nrm(next(ki), (D, D)).astype(jnp.bfloat16),
            out_b=jnp.zeros((D,), jnp.float32),
            ln1_g=jnp.ones((D,), jnp.float32),
            ln1_b=jnp.zeros((D,), jnp.float32),
            ff1_w=nrm(next(ki), (D, 4 * D)).astype(jnp.bfloat16),
            ff1_b=jnp.zeros((4 * D,), jnp.float32),
            ff2_w=nrm(next(ki), (4 * D, D)).astype(jnp.bfloat16),
            ff2_b=jnp.zeros((D,), jnp.float32),
            ln2_g=jnp.ones((D,), jnp.float32),
            ln2_b=jnp.zeros((D,), jnp.float32),
        ))

    return dict(
        tok_emb=tok_emb, pos_emb=pos_emb, emb_T=emb_T, layers=layers,
        cfg=dict(padding_idx=padding_idx, embeddings_size=D, n_heads=n_heads,
                 n_pos_embeddings=n_pos_embeddings),
    )


# ----------------------------------------------------------------------------
if __name__ == "__main__":
    # Small config consistent with the module's constructor arguments.
    n_layers = 2
    n_embeddings = 128        # vocab size (tied pre_softmax output dim)
    n_pos_embeddings = 64
    embeddings_size = 32
    padding_idx = 0
    n_heads = 4
    B, T = 2, 8               # decoder input (B, T) token ids
    S = 8                     # one encoder context of length S

    key = jax.random.PRNGKey(0)
    k_par, k_x, k_c = jax.random.split(key, 3)

    params = init_params(k_par, n_layers, n_embeddings, n_pos_embeddings,
                         embeddings_size, padding_idx, n_heads)

    # token ids in [3, vocab) so no padding tokens appear in the demo inputs
    x_ids = jax.random.randint(k_x, (B, T), 3, n_embeddings, dtype=jnp.int32)
    ctx_ids = jax.random.randint(k_c, (B, S), 3, n_embeddings, dtype=jnp.int32)

    logits = model_forward(params, x_ids, [ctx_ids])
    logits = jax.block_until_ready(logits)

    assert logits.shape == (B, T, n_embeddings)
    assert bool(jnp.all(jnp.isfinite(logits)))
    print("KERNEL_OK")
</pallas_src>

<mosaic_0001>
module attributes {stable_mosaic.version = 11 : i64} {
  func.func @_linear_kernel(%arg0: i32, %arg1: i32, %arg2: memref<16x32xbf16, #tpu.memory_space<vmem>>, %arg3: memref<32x96xbf16, #tpu.memory_space<vmem>>, %arg4: memref<1x96xf32, #tpu.memory_space<vmem>>, %arg5: memref<16x96xbf16, #tpu.memory_space<vmem>>) attributes {dimension_semantics = [#tpu.dimension_semantics<parallel>, #tpu.dimension_semantics<parallel>], iteration_bounds = array<i64: 1, 1>, scalar_prefetch = 0 : i64, scratch_operands = 0 : i64, tpu.core_type = #tpu.core_type<tc>, window_params = [{transform_indices = @transform_0, window_bounds = array<i64: 16, 32>}, {transform_indices = @transform_1, window_bounds = array<i64: 32, 96>}, {transform_indices = @transform_2, window_bounds = array<i64: 1, 96>}, {transform_indices = @transform_3, window_bounds = array<i64: 16, 96>}]} {
    %c0 = arith.constant 0 : index
    %c0_0 = arith.constant 0 : index
    %0 = vector.load %arg2[%c0, %c0_0] : memref<16x32xbf16, #tpu.memory_space<vmem>>, vector<16x32xbf16>
    %c0_1 = arith.constant 0 : index
    %c0_2 = arith.constant 0 : index
    %1 = vector.load %arg3[%c0_1, %c0_2] : memref<32x96xbf16, #tpu.memory_space<vmem>>, vector<32x96xbf16>
    %cst = arith.constant dense<0.000000e+00> : vector<16x96xf32>
    %2 = tpu.matmul %0, %1, %cst {dimension_numbers = #tpu.dot_dimension_numbers<[1], [0], [0], [1], [0, 0, 1, 1], [], []>} : vector<16x32xbf16>, vector<32x96xbf16>, vector<16x96xf32> -> vector<16x96xf32>
    %c0_3 = arith.constant 0 : index
    %c0_4 = arith.constant 0 : index
    %3 = vector.load %arg4[%c0_3, %c0_4] : memref<1x96xf32, #tpu.memory_space<vmem>>, vector<1x96xf32>
    %4 = vector.broadcast %3 : vector<1x96xf32> to vector<16x96xf32>
    %5 = arith.addf %2, %4 : vector<16x96xf32>
    %6 = arith.truncf %5 : vector<16x96xf32> to vector<16x96xbf16>
    %c0_5 = arith.constant 0 : index
    %c0_6 = arith.constant 0 : index
    %7 = vector.load %arg5[%c0_5, %c0_6] : memref<16x96xbf16, #tpu.memory_space<vmem>>, vector<16x96xbf16>
    tpu.vector_store %arg5[%c0_5, %c0_6], %6 {strides = array<i32>} : memref<16x96xbf16, #tpu.memory_space<vmem>>, vector<16x96xbf16>,
    return
  }
  func.func @transform_0(%arg0: i32, %arg1: i32) -> (i32, i32) {
    %c0_i32 = arith.constant 0 : i32
    %c0_i32_0 = arith.constant 0 : i32
    return %arg0, %c0_i32 : i32, i32
  }
  func.func @transform_1(%arg0: i32, %arg1: i32) -> (i32, i32) {
    %c0_i32 = arith.constant 0 : i32
    %c0_i32_0 = arith.constant 0 : i32
    return %c0_i32, %arg1 : i32, i32
  }
  func.func @transform_2(%arg0: i32, %arg1: i32) -> (i32, i32) {
    %c0_i32 = arith.constant 0 : i32
    %c0_i32_0 = arith.constant 0 : i32
    return %c0_i32, %arg1 : i32, i32
  }
  func.func @transform_3(%arg0: i32, %arg1: i32) -> (i32, i32) {
    %c0_i32 = arith.constant 0 : i32
    return %arg0, %arg1 : i32, i32
  }
}

</mosaic_0001>

<bundles_post_ra>
// kernel: tpu_custom_call.1
= control target key start
LH: loop header
LB: loop body
LE: loop exit
PB: predicated region body
PF: predicated region fallthrough
CT: control target
= control target key end

     0   :  { %8 = vsyncpa [#allocation3], 0  ;;  %s325_s0 = inlined_call_operand.hbm [shape: bf16[16,32], index: 0, kind: input, shape index: {}]   ;;  %s326_s1 = inlined_call_operand.hbm [shape: bf16[32,96], index: 1, kind: input, shape index: {}]   ;;  %s327_s2 = inlined_call_operand.vmem [shape: f32[1,96], index: 2, kind: input, shape index: {}]   ;;  %s328_s3 = inlined_call_operand.hbm [shape: bf16[16,96], index: 3, kind: output, shape index: {}]  }
   0x1   :  { %9 = vsyncpa [#allocation6], 0 }
   0x2   :  { %10 = vsyncpa [#allocation4], 0  ;;  %s250_s12 = smov [#allocation2]   ;;  %s178_s16 = scalar_lea.hbm %s325_s0, 128 }
   0x3   :  { %s16_s13 = sshll.u32 %s250_s12, 4  ;;  %p179_p0 = scmp.ne.s32.totalorder %s325_s0, %s178_s16  ;;  %s17_s13 = int_to_ptr.vmem [resolvable:$true] %s16_s13 }
   0x4   :  { %p182_p1 = scmp.lt.u32.totalorder %s178_s16, %s325_s0 }
   0x6   :  { %p184_p2 = pnand %p182_p1, %p179_p0 }
   0x8   :  { %187 = shalt.err (!%p184_p2)
}
   0x9   :  { %s188_s21 = scalar_lea.vmem %s17_s13, 128  ;;  %p193_p4 = scmp.lt.s32.totalorder %s17_s13, %s17_s13 }
   0xa   :  { %p189_p3 = scmp.ne.s32.totalorder %s17_s13, %s188_s21  ;;  %p194_p5 = scmp.lt.s32.totalorder %s188_s21, %s188_s21 }
   0xc   :  { %p195_p6 = por %p194_p5, %p193_p4 }
   0xe   :  { %p196_p7 = pnand %p195_p6, %p189_p3 }
  0x10   :  { %199 = shalt.err (!%p196_p7)
}
  0x11   :  { %s251_s22 = smov 64   ;;  %s252_s23 = smov 4  }
  0x12   :  { %22 = dma.hbm_to_vmem [thread:$0]  %s325_s0, 128, %s17_s13, [#allocation3], %s251_s22, %s251_s22, %s252_s23  }
  0x13   :  { %s253_s26 = smov [#allocation5]   ;;  %s200_s30 = scalar_lea.hbm %s326_s1, 256 }
  0x14   :  { %s28_s27 = sshll.u32 %s253_s26, 4  ;;  %p201_p8 = scmp.ne.s32.totalorder %s326_s1, %s200_s30  ;;  %s29_s27 = int_to_ptr.vmem [resolvable:$true] %s28_s27 }
  0x15   :  { %p204_p9 = scmp.lt.u32.totalorder %s200_s30, %s326_s1 }
  0x17   :  { %p206_p10 = pnand %p204_p9, %p201_p8 }
  0x19   :  { %209 = shalt.err (!%p206_p10)
}
  0x1a   :  { %s210_s8 = scalar_lea.vmem %s29_s27, 256  ;;  %p215_p12 = scmp.lt.s32.totalorder %s29_s27, %s29_s27 }
  0x1b   :  { %p211_p11 = scmp.ne.s32.totalorder %s29_s27, %s210_s8  ;;  %p216_p13 = scmp.lt.s32.totalorder %s210_s8, %s210_s8 }
  0x1d   :  { %p217_p0 = por %p216_p13, %p215_p12 }
  0x1f   :  { %p218_p1 = pnand %p217_p0, %p211_p11 }
  0x21   :  { %221 = shalt.err (!%p218_p1)
}
  0x22   :  { %34 = dma.hbm_to_vmem [thread:$0]  %s326_s1, 256, %s29_s27, [#allocation6], %s251_s22, %s251_s22, %s252_s23  }
  0x23   :  { %244 = dma.done.wait [#allocation3], 128  }
  0x24   :  { %245 = vsyncadd [#allocation3], 4294967168 }
  0x25   :  { %246 = dma.done.wait [#allocation6], 256  }
  0x26   :  { %247 = vsyncadd [#allocation6], 4294967040  ;;  %v254_v0 = vmov 0.0   ;;  %vm255_vm0 = vmmov 0   ;;  %v175_v1 = vld [vmem:[#allocation5] sm:$0xff]   ;;  %v176_v2 = vld [vmem:[#allocation5 + $0x8] sm:$0xff]  }
  0x27   :  { %160 = vmatprep.subr.bf16.mxu0 %v254_v0  ;;  %164 = vmatprep.mubr.msk.bf16.mxu0 %vm255_vm0, %v254_v0  ;;  %v177_v3 = vld [vmem:[#allocation2] sm:$0xff]   ;;  %vm74_vm1 = vcmask 261120   ;;  %vm127_vm2 = vcmask 781312   ;;  %s256_s1 = smov [#allocation7]  }
  0x28   :  { %161 = vmatpush3.bf16.msra.mxu0 %v175_v1  ;;  %v148_v4 = vld [vmem:[%s327_s2] ss:$0 sm:$0xff]  ;;  %s135_s12 = sshll.u32 %s256_s1, 4  ;;  %s136_s12 = int_to_ptr.vmem [resolvable:$true] %s135_s12 }
  0x29   :  { %162 = vmatprep.subr.bf16.mxu0 %v254_v0  ;;  %s222_s13 = scalar_lea.vmem %s136_s12, 128  ;;  %p227_p3 = scmp.lt.s32.totalorder %s136_s12, %s136_s12 }
  0x2a   :  { %p223_p2 = scmp.ne.s32.totalorder %s136_s12, %s222_s13  ;;  %p228_p4 = scmp.lt.s32.totalorder %s222_s13, %s222_s13 }
  0x2c   :  { %163 = vmatpush3.bf16.msra.mxu0 %v176_v2  ;;  %p229_p5 = por %p228_p4, %p227_p3 }
  0x2e   :  { %p230_p6 = pnand %p229_p5, %p223_p2 }
  0x2f   :  { %165 = vmatmul.mubr.msk.bf16.vlgmr.msra.gmra.mrb[0].mxu0 %vm74_vm1, %v177_v3 }
 0x102   :  { %v112_v5 = vpop.f32.mrb[0].mxu0 }
 0x103   :  { %v113_v6 = vadd.f32 %v148_v4, %v112_v5  ;;  %v166_v7 = vpop.f32.mrb[1].mxu0 }
 0x104   :  { %v115_v8 = vpop.f32.mrb[2].mxu0 }
 0x105   :  { %v155_v9 = vpack.c.bf16 %v113_v6, %v113_v6  ;;  %v116_v10 = vadd.f32 %v148_v4, %v115_v8  ;;  %v167_v11 = vpop.f32.mrb[3].mxu0 }
 0x107   :  { %v156_v12 = vpack.c.bf16 %v116_v10, %v116_v10  ;;  %128 = vst.msk [vmem:[#allocation7] sm:$0xf] %vm127_vm2, %v155_v9 }
 0x109   :  { %129 = vst.msk [vmem:[#allocation7 + $0x4] sm:$0xf] %vm127_vm2, %v156_v12 }
 0x10a   :  { %233 = shalt.err (!%p230_p6)
}
 0x10b   :  { %s234_s15 = scalar_lea.hbm %s328_s3, 128 }
 0x10c   :  { %p235_p7 = scmp.ne.s32.totalorder %s328_s3, %s234_s15  ;;  %p238_p8 = scmp.lt.u32.totalorder %s234_s15, %s328_s3 }
 0x10e   :  { %p240_p9 = pnand %p238_p8, %p235_p7 }
 0x110   :  { %243 = shalt.err (!%p240_p9)
}
 0x111   :  { %141 = dma.vmem_to_hbm [thread:$0]  %s136_s12, 128, %s328_s3, [#allocation4], %s251_s22, %s251_s22, %s252_s23  }
 0x112   :  { %248 = dma.done.wait [#allocation4], 128  }
 0x113   :  { %249 = vsyncadd [#allocation4], 4294967168 }
 0x114   :  { %145 = vsyncpa [#allocation3], 1 }
 0x115   :  { %146 = vsyncpa [#allocation6], 1 }
 0x116   :  { %147 = vsyncpa [#allocation4], 1 }

</bundles_post_ra>
